<compile_context>
chip_gen: v6e
topology: v6e:2x2x1
jax: 0.10.0
libtpu: 0.0.40
codegen_flags: <defaults>
</compile_context>

<pallas_src>
import functools

import jax
import jax.numpy as jnp
from jax.experimental import pallas as pl
from jax.experimental.pallas import tpu as pltpu

_KEYS = ("dist", "omega", "theta", "phi")
_F32_TINY = float(jnp.finfo(jnp.float32).tiny)


def _bkg_loss_kernel(*refs, n_keys, key_weights):
    """One lane-tile of the fused background-KL reduction.

    refs layout:
      p_0..p_{n-1}       : [B, C_k, T]  probability tiles (any float dtype)
      logq_0..logq_{n-1} : [1, C_k, T]  precomputed log-background tiles
      mask               : [1, T]       f32 spatial mask (0 on padded / ragged lanes)
      out                : [1, 8, 128]  per-tile partial sum (scalar replicated)
    """
    p_refs = refs[:n_keys]
    logq_refs = refs[n_keys:2 * n_keys]
    mask_ref = refs[2 * n_keys]
    out_ref = refs[2 * n_keys + 1]

    mask = mask_ref[...]                                     # [1, T]

    total = None
    for k in range(n_keys):
        p = p_refs[k][...].astype(jnp.float32)               # [B, C_k, T]
        logq = logq_refs[k][...].astype(jnp.float32)         # [1, C_k, T]
        # p * (log p - log q); max() guard: p == 0 -> 0 * finite = 0.
        kl = p * (jnp.log(jnp.maximum(p, _F32_TINY)) - logq)
        per_lane = jnp.sum(kl, axis=1)                       # [B, T] (channel reduce)
        w = float(key_weights[k])                            # static Python scalar
        if w != 1.0:
            per_lane = per_lane * w
        total = per_lane if total is None else total + per_lane

    # Select (not multiply) so garbage on the ragged last tile cannot poison the sum;
    # the multiply preserves fractional-mask semantics of the reference.
    total = jnp.where(mask > 0.0, total * mask, 0.0)         # [B, T]

    tile_sum = jnp.sum(total, axis=1, keepdims=True)         # [B, 1]
    tile_sum = jnp.sum(tile_sum, axis=0, keepdims=True)      # [1, 1]
    out_ref[...] = jnp.broadcast_to(tile_sum, out_ref.shape)


def structural_background_loss(structure_distributions, backgrounds,
                               hallucination_mask=None,
                               weights=(1.0, 1.0, 1.0, 1.0),
                               p_dtype=jnp.bfloat16,
                               logq_dtype=None,
                               lane_tile=None):
    """JAX/Pallas equivalent of Structural_Background_Loss.forward.

    structure_distributions / backgrounds: dicts with keys 'dist','omega','theta','phi';
    values [B, C_k, L, L] / [1, C_k, L, L].  hallucination_mask: optional [L, L].
    p_dtype: HBM transport dtype of the distributions (cast fuses with the upstream
    softmax under jit); in-kernel math stays f32.  Returns a scalar float32 loss.
    """
    weights = tuple(float(w) for w in (weights or (1.0,) * len(_KEYS)))

    p0 = structure_distributions["dist"]
    B = p0.shape[0]
    L = p0.shape[2]
    LL = L * L

    # Fold a uniform key weight into the final scale (no in-kernel multiplies).
    if all(w == weights[0] for w in weights):
        scale = weights[0] / float(B * LL)
        key_weights = (1.0,) * len(_KEYS)
    else:
        scale = 1.0 / float(B * LL)
        key_weights = weights

    p_dtype = jnp.dtype(p0.dtype if p_dtype is None else p_dtype)
    if logq_dtype is None:
        # log-background traffic is 1/B of p's -> keep it f32 unless B == 1.
        logq_dtype = p_dtype if (B == 1 and p_dtype.itemsize < 4) else jnp.dtype(jnp.float32)
    logq_dtype = jnp.dtype(logq_dtype)

    ps, logqs, c_per_key = [], [], []
    for key in _KEYS:
        p = structure_distributions[key]
        q = backgrounds[key]
        C = p.shape[1]
        c_per_key.append(C)
        # Copy-free reshape; the dtype cast fuses with the producer under jit.
        ps.append(p.reshape(B, C, LL).astype(p_dtype))
        # log(background) is a constant -> precompute once (cache across calls in real use).
        logqs.append(jnp.log(q.astype(jnp.float32)).reshape(1, C, LL).astype(logq_dtype))
    C_total = sum(c_per_key)
    C_max = max(c_per_key)
    bpe_p, bpe_q = p_dtype.itemsize, logq_dtype.itemsize

    # ---------------- lane-tile sizing ----------------
    try:
        vmem_cap = int(pltpu.get_tpu_info().vmem_capacity_bytes)
    except Exception:
        vmem_cap = 64 * 1024 * 1024        # conservative (v7x) fallback

    if lane_tile is not None:
        T = int(lane_tile)
    elif LL <= 128:
        T = LL                              # single block == full extent (always legal)
    else:
        # Aim for >= ~8 pipeline steps, cap at 2048 lanes, keep a multiple of 128, <= LL.
        T = max(128, min(2048, (LL // (8 * 128)) * 128))
        T = min(T, (LL // 128) * 128)

    def _vmem_footprint(t):
        io = 2 * t * (B * C_total * bpe_p + C_total * bpe_q + 4)   # double-buffered I/O
        tmp = (3 * B * C_max + 2 * B) * t * 4                       # f32 elementwise temps
        return io + tmp + 2 * 8 * 128 * 4

    budget = int(vmem_cap * 0.6)
    while lane_tile is None and T > 128 and _vmem_footprint(T) > budget:
        T -= 128

    num_tiles = int(pl.cdiv(LL, T))
    LL_padded = num_tiles * T

    # ---------------- mask (only thing that gets padded) ----------------
    if hallucination_mask is None:
        mask = jnp.ones((1, LL), jnp.float32)
    else:
        mask = hallucination_mask.reshape(1, LL).astype(jnp.float32)
    if LL_padded != LL:
        mask = jnp.pad(mask, ((0, 0), (0, LL_padded - LL)))   # zeros reject ragged lanes

    # ---------------- pallas_call ----------------
    kernel = functools.partial(_bkg_loss_kernel,
                               n_keys=len(_KEYS), key_weights=key_weights)

    in_specs = (
        [pl.BlockSpec((B, c, T), lambda t: (0, 0, t)) for c in c_per_key]
        + [pl.BlockSpec((1, c, T), lambda t: (0, 0, t)) for c in c_per_key]
        + [pl.BlockSpec((1, T), lambda t: (0, t))]
    )
    out_spec = pl.BlockSpec((1, 8, 128), lambda t: (t, 0, 0))

    elems = B * C_total * LL
    cost = pl.CostEstimate(
        flops=5 * elems,
        transcendentals=elems,
        bytes_accessed=int(elems * bpe_p + C_total * LL * bpe_q + LL * 4
                           + num_tiles * 8 * 128 * 4))

    vmem_limit = int(min(int(vmem_cap * 0.9),
                         max(16 * 1024 * 1024, _vmem_footprint(T) + (4 << 20))))

    partials = pl.pallas_call(
        kernel,
        out_shape=jax.ShapeDtypeStruct((num_tiles, 8, 128), jnp.float32),
        grid=(num_tiles,),
        in_specs=in_specs,
        out_specs=out_spec,
        compiler_params=pltpu.CompilerParams(
            dimension_semantics=("parallel",),
            vmem_limit_bytes=vmem_limit),
        cost_estimate=cost,
    )(*ps, *logqs, mask)

    # Tiny final reduction over the per-tile partials (keeps the grid axis parallel).
    return -scale * jnp.sum(partials[:, 0, 0])


def _reference_loss(structure_distributions, backgrounds, mask, weights):
    """Pure-JAX reference mirroring the PyTorch forward pass."""
    total = jnp.float32(0.0)
    for w, k in zip(weights, _KEYS):
        p = structure_distributions[k].astype(jnp.float32)
        q = backgrounds[k].astype(jnp.float32)
        kl = (p * jnp.log(p / q)).sum(axis=1)                # [B, L, L]
        if mask is not None:
            kl = kl * mask[None]
        total = total + w * (-jnp.mean(kl))
    return total


def _make_inputs(key, B, L, channels):
    dists, bkgs = {}, {}
    for name, C in channels.items():
        key, k1, k2 = jax.random.split(key, 3)
        dists[name] = jax.nn.softmax(
            jax.random.normal(k1, (B, C, L, L), jnp.float32), axis=1)
        bkgs[name] = jax.nn.softmax(
            jax.random.normal(k2, (1, C, L, L), jnp.float32), axis=1)
    return key, dists, bkgs


if __name__ == "__main__":
    key = jax.random.PRNGKey(0)
    B, L = 2, 16
    # trDesign uses 37/37/37/19 bins; small synthetic channel counts here.
    channels = {"dist": 8, "omega": 8, "theta": 8, "phi": 4}

    key, dists, bkgs = _make_inputs(key, B, L, channels)
    key, km = jax.random.split(key)
    mask = (jax.random.uniform(km, (L, L)) > 0.25).astype(jnp.float32)

    # 1) f32 transport, uniform weights (weight folded into the final scale)
    w_uniform = (1.0, 1.0, 1.0, 1.0)
    loss_u = jax.block_until_ready(structural_background_loss(
        dists, bkgs, hallucination_mask=mask, weights=w_uniform,
        p_dtype=jnp.float32))
    ref_u = _reference_loss(dists, bkgs, mask, w_uniform)
    assert jnp.allclose(loss_u, ref_u, rtol=1e-4, atol=1e-5), (float(loss_u), float(ref_u))

    # 2) f32 transport, non-uniform weights (per-key scalar weight path)
    w_mixed = (1.0, 0.5, 2.0, 1.5)
    loss_m = jax.block_until_ready(structural_background_loss(
        dists, bkgs, hallucination_mask=mask, weights=w_mixed,
        p_dtype=jnp.float32))
    ref_m = _reference_loss(dists, bkgs, mask, w_mixed)
    assert jnp.allclose(loss_m, ref_m, rtol=1e-4, atol=1e-5), (float(loss_m), float(ref_m))

    # 3) default bf16 transport (halves p HBM traffic; f32 math/accumulation in-kernel)
    loss_bf16 = jax.block_until_ready(structural_background_loss(
        dists, bkgs, hallucination_mask=mask, weights=w_mixed))
    assert bool(jnp.isfinite(loss_bf16))
    assert jnp.allclose(loss_bf16, ref_m, rtol=5e-2, atol=5e-2), (float(loss_bf16), float(ref_m))

    # 4) no-mask path, f32
    loss_nm = jax.block_until_ready(structural_background_loss(
        dists, bkgs, hallucination_mask=None, weights=w_uniform,
        p_dtype=jnp.float32))
    ref_nm = _reference_loss(dists, bkgs, None, w_uniform)
    assert jnp.allclose(loss_nm, ref_nm, rtol=1e-4, atol=1e-5), (float(loss_nm), float(ref_nm))

    # 5) ragged L*L (144 lanes, 2 tiles of 128 -> last tile overhangs; select must reject it)
    L_r = 12
    key, dists_r, bkgs_r = _make_inputs(key, B, L_r, channels)
    key, kr = jax.random.split(key)
    mask_r = (jax.random.uniform(kr, (L_r, L_r)) > 0.25).astype(jnp.float32)
    loss_r = jax.block_until_ready(structural_background_loss(
        dists_r, bkgs_r, hallucination_mask=mask_r, weights=w_mixed,
        p_dtype=jnp.float32))
    ref_r = _reference_loss(dists_r, bkgs_r, mask_r, w_mixed)
    assert jnp.allclose(loss_r, ref_r, rtol=1e-4, atol=1e-5), (float(loss_r), float(ref_r))

    print("KERNEL_OK")
</pallas_src>

<mosaic_0001>
module attributes {stable_mosaic.version = 11 : i64} {
  func.func @_bkg_loss_kernel(%arg0: i32, %arg1: memref<2x8x128xf32, #tpu.memory_space<vmem>>, %arg2: memref<2x8x128xf32, #tpu.memory_space<vmem>>, %arg3: memref<2x8x128xf32, #tpu.memory_space<vmem>>, %arg4: memref<2x4x128xf32, #tpu.memory_space<vmem>>, %arg5: memref<1x8x128xf32, #tpu.memory_space<vmem>>, %arg6: memref<1x8x128xf32, #tpu.memory_space<vmem>>, %arg7: memref<1x8x128xf32, #tpu.memory_space<vmem>>, %arg8: memref<1x4x128xf32, #tpu.memory_space<vmem>>, %arg9: memref<1x128xf32, #tpu.memory_space<vmem>>, %arg10: memref<1x8x128xf32, #tpu.memory_space<vmem>>) attributes {dimension_semantics = [#tpu.dimension_semantics<parallel>], iteration_bounds = array<i64: 2>, scalar_prefetch = 0 : i64, scratch_operands = 0 : i64, tpu.core_type = #tpu.core_type<tc>, window_params = [{transform_indices = @transform_0, window_bounds = array<i64: 2, 8, 128>}, {transform_indices = @transform_1, window_bounds = array<i64: 2, 8, 128>}, {transform_indices = @transform_2, window_bounds = array<i64: 2, 8, 128>}, {transform_indices = @transform_3, window_bounds = array<i64: 2, 4, 128>}, {transform_indices = @transform_4, window_bounds = array<i64: 1, 8, 128>}, {transform_indices = @transform_5, window_bounds = array<i64: 1, 8, 128>}, {transform_indices = @transform_6, window_bounds = array<i64: 1, 8, 128>}, {transform_indices = @transform_7, window_bounds = array<i64: 1, 4, 128>}, {transform_indices = @transform_8, window_bounds = array<i64: 1, 128>}, {transform_indices = @transform_9, window_bounds = array<i64: 1, 8, 128>}]} {
    %c0 = arith.constant 0 : index
    %c0_0 = arith.constant 0 : index
    %0 = vector.load %arg9[%c0, %c0_0] : memref<1x128xf32, #tpu.memory_space<vmem>>, vector<1x128xf32>
    %c0_1 = arith.constant 0 : index
    %c0_2 = arith.constant 0 : index
    %c0_3 = arith.constant 0 : index
    %1 = vector.load %arg1[%c0_1, %c0_2, %c0_3] : memref<2x8x128xf32, #tpu.memory_space<vmem>>, vector<2x8x128xf32>
    %c0_4 = arith.constant 0 : index
    %c0_5 = arith.constant 0 : index
    %c0_6 = arith.constant 0 : index
    %2 = vector.load %arg5[%c0_4, %c0_5, %c0_6] : memref<1x8x128xf32, #tpu.memory_space<vmem>>, vector<1x8x128xf32>
    %cst = arith.constant 1.17549435E-38 : f32
    %3 = vector.broadcast %cst : f32 to vector<2x8x128xf32>
    %4 = arith.maximumf %1, %3 : vector<2x8x128xf32>
    %5 = math.log %4 : vector<2x8x128xf32>
    %6 = vector.broadcast %2 : vector<1x8x128xf32> to vector<2x8x128xf32>
    %7 = arith.subf %5, %6 : vector<2x8x128xf32>
    %8 = arith.mulf %1, %7 : vector<2x8x128xf32>
    %cst_7 = arith.constant dense<0.000000e+00> : vector<2x128xf32>
    %9 = vector.multi_reduction <add>, %8, %cst_7 [1] : vector<2x8x128xf32> to vector<2x128xf32>
    %c0_8 = arith.constant 0 : index
    %c0_9 = arith.constant 0 : index
    %c0_10 = arith.constant 0 : index
    %10 = vector.load %arg2[%c0_8, %c0_9, %c0_10] : memref<2x8x128xf32, #tpu.memory_space<vmem>>, vector<2x8x128xf32>
    %c0_11 = arith.constant 0 : index
    %c0_12 = arith.constant 0 : index
    %c0_13 = arith.constant 0 : index
    %11 = vector.load %arg6[%c0_11, %c0_12, %c0_13] : memref<1x8x128xf32, #tpu.memory_space<vmem>>, vector<1x8x128xf32>
    %cst_14 = arith.constant 1.17549435E-38 : f32
    %12 = vector.broadcast %cst_14 : f32 to vector<2x8x128xf32>
    %13 = arith.maximumf %10, %12 : vector<2x8x128xf32>
    %14 = math.log %13 : vector<2x8x128xf32>
    %15 = vector.broadcast %11 : vector<1x8x128xf32> to vector<2x8x128xf32>
    %16 = arith.subf %14, %15 : vector<2x8x128xf32>
    %17 = arith.mulf %10, %16 : vector<2x8x128xf32>
    %cst_15 = arith.constant dense<0.000000e+00> : vector<2x128xf32>
    %18 = vector.multi_reduction <add>, %17, %cst_15 [1] : vector<2x8x128xf32> to vector<2x128xf32>
    %19 = arith.addf %9, %18 : vector<2x128xf32>
    %c0_16 = arith.constant 0 : index
    %c0_17 = arith.constant 0 : index
    %c0_18 = arith.constant 0 : index
    %20 = vector.load %arg3[%c0_16, %c0_17, %c0_18] : memref<2x8x128xf32, #tpu.memory_space<vmem>>, vector<2x8x128xf32>
    %c0_19 = arith.constant 0 : index
    %c0_20 = arith.constant 0 : index
    %c0_21 = arith.constant 0 : index
    %21 = vector.load %arg7[%c0_19, %c0_20, %c0_21] : memref<1x8x128xf32, #tpu.memory_space<vmem>>, vector<1x8x128xf32>
    %cst_22 = arith.constant 1.17549435E-38 : f32
    %22 = vector.broadcast %cst_22 : f32 to vector<2x8x128xf32>
    %23 = arith.maximumf %20, %22 : vector<2x8x128xf32>
    %24 = math.log %23 : vector<2x8x128xf32>
    %25 = vector.broadcast %21 : vector<1x8x128xf32> to vector<2x8x128xf32>
    %26 = arith.subf %24, %25 : vector<2x8x128xf32>
    %27 = arith.mulf %20, %26 : vector<2x8x128xf32>
    %cst_23 = arith.constant dense<0.000000e+00> : vector<2x128xf32>
    %28 = vector.multi_reduction <add>, %27, %cst_23 [1] : vector<2x8x128xf32> to vector<2x128xf32>
    %29 = arith.addf %19, %28 : vector<2x128xf32>
    %c0_24 = arith.constant 0 : index
    %c0_25 = arith.constant 0 : index
    %c0_26 = arith.constant 0 : index
    %30 = vector.load %arg4[%c0_24, %c0_25, %c0_26] : memref<2x4x128xf32, #tpu.memory_space<vmem>>, vector<2x4x128xf32>
    %c0_27 = arith.constant 0 : index
    %c0_28 = arith.constant 0 : index
    %c0_29 = arith.constant 0 : index
    %31 = vector.load %arg8[%c0_27, %c0_28, %c0_29] : memref<1x4x128xf32, #tpu.memory_space<vmem>>, vector<1x4x128xf32>
    %cst_30 = arith.constant 1.17549435E-38 : f32
    %32 = vector.broadcast %cst_30 : f32 to vector<2x4x128xf32>
    %33 = arith.maximumf %30, %32 : vector<2x4x128xf32>
    %34 = math.log %33 : vector<2x4x128xf32>
    %35 = vector.broadcast %31 : vector<1x4x128xf32> to vector<2x4x128xf32>
    %36 = arith.subf %34, %35 : vector<2x4x128xf32>
    %37 = arith.mulf %30, %36 : vector<2x4x128xf32>
    %cst_31 = arith.constant dense<0.000000e+00> : vector<2x128xf32>
    %38 = vector.multi_reduction <add>, %37, %cst_31 [1] : vector<2x4x128xf32> to vector<2x128xf32>
    %39 = arith.addf %29, %38 : vector<2x128xf32>
    %cst_32 = arith.constant 0.000000e+00 : f32
    %40 = vector.broadcast %cst_32 : f32 to vector<1x128xf32>
    %41 = arith.cmpf ogt, %0, %40 : vector<1x128xf32>
    %42 = vector.broadcast %0 : vector<1x128xf32> to vector<2x128xf32>
    %43 = arith.mulf %39, %42 : vector<2x128xf32>
    %cst_33 = arith.constant 0.000000e+00 : f32
    %44 = vector.shape_cast %41 : vector<1x128xi1> to vector<1x128xi1>
    %45 = vector.broadcast %44 : vector<1x128xi1> to vector<2x128xi1>
    %46 = vector.broadcast %cst_33 : f32 to vector<2x128xf32>
    %47 = arith.select %45, %43, %46 : vector<2x128xi1>, vector<2x128xf32>
    %cst_34 = arith.constant dense<0.000000e+00> : vector<2xf32>
    %48 = vector.multi_reduction <add>, %47, %cst_34 [1] : vector<2x128xf32> to vector<2xf32>
    %49 = vector.shape_cast %48 : vector<2xf32> to vector<2x1xf32>
    %cst_35 = arith.constant dense<0.000000e+00> : vector<1xf32>
    %50 = vector.multi_reduction <add>, %49, %cst_35 [0] : vector<2x1xf32> to vector<1xf32>
    %51 = vector.shape_cast %50 : vector<1xf32> to vector<1x1xf32>
    %52 = vector.shape_cast %51 : vector<1x1xf32> to vector<1x1x1xf32>
    %53 = vector.broadcast %52 : vector<1x1x1xf32> to vector<1x8x128xf32>
    %c0_36 = arith.constant 0 : index
    %c0_37 = arith.constant 0 : index
    %c0_38 = arith.constant 0 : index
    %54 = vector.load %arg10[%c0_36, %c0_37, %c0_38] : memref<1x8x128xf32, #tpu.memory_space<vmem>>, vector<1x8x128xf32>
    tpu.vector_store %arg10[%c0_36, %c0_37, %c0_38], %53 {strides = array<i32>} : memref<1x8x128xf32, #tpu.memory_space<vmem>>, vector<1x8x128xf32>,
    return
  }
  func.func @transform_0(%arg0: i32) -> (i32, i32, i32) {
    %c0_i32 = arith.constant 0 : i32
    %c0_i32_0 = arith.constant 0 : i32
    %c0_i32_1 = arith.constant 0 : i32
    return %c0_i32, %c0_i32_0, %arg0 : i32, i32, i32
  }
  func.func @transform_1(%arg0: i32) -> (i32, i32, i32) {
    %c0_i32 = arith.constant 0 : i32
    %c0_i32_0 = arith.constant 0 : i32
    %c0_i32_1 = arith.constant 0 : i32
    return %c0_i32, %c0_i32_0, %arg0 : i32, i32, i32
  }
  func.func @transform_2(%arg0: i32) -> (i32, i32, i32) {
    %c0_i32 = arith.constant 0 : i32
    %c0_i32_0 = arith.constant 0 : i32
    %c0_i32_1 = arith.constant 0 : i32
    return %c0_i32, %c0_i32_0, %arg0 : i32, i32, i32
  }
  func.func @transform_3(%arg0: i32) -> (i32, i32, i32) {
    %c0_i32 = arith.constant 0 : i32
    %c0_i32_0 = arith.constant 0 : i32
    %c0_i32_1 = arith.constant 0 : i32
    return %c0_i32, %c0_i32_0, %arg0 : i32, i32, i32
  }
  func.func @transform_4(%arg0: i32) -> (i32, i32, i32) {
    %c0_i32 = arith.constant 0 : i32
    %c0_i32_0 = arith.constant 0 : i32
    %c0_i32_1 = arith.constant 0 : i32
    return %c0_i32, %c0_i32_0, %arg0 : i32, i32, i32
  }
  func.func @transform_5(%arg0: i32) -> (i32, i32, i32) {
    %c0_i32 = arith.constant 0 : i32
    %c0_i32_0 = arith.constant 0 : i32
    %c0_i32_1 = arith.constant 0 : i32
    return %c0_i32, %c0_i32_0, %arg0 : i32, i32, i32
  }
  func.func @transform_6(%arg0: i32) -> (i32, i32, i32) {
    %c0_i32 = arith.constant 0 : i32
    %c0_i32_0 = arith.constant 0 : i32
    %c0_i32_1 = arith.constant 0 : i32
    return %c0_i32, %c0_i32_0, %arg0 : i32, i32, i32
  }
  func.func @transform_7(%arg0: i32) -> (i32, i32, i32) {
    %c0_i32 = arith.constant 0 : i32
    %c0_i32_0 = arith.constant 0 : i32
    %c0_i32_1 = arith.constant 0 : i32
    return %c0_i32, %c0_i32_0, %arg0 : i32, i32, i32
  }
  func.func @transform_8(%arg0: i32) -> (i32, i32) {
    %c0_i32 = arith.constant 0 : i32
    %c0_i32_0 = arith.constant 0 : i32
    return %c0_i32, %arg0 : i32, i32
  }
  func.func @transform_9(%arg0: i32) -> (i32, i32, i32) {
    %c0_i32 = arith.constant 0 : i32
    %c0_i32_0 = arith.constant 0 : i32
    %c0_i32_1 = arith.constant 0 : i32
    return %arg0, %c0_i32, %c0_i32_0 : i32, i32, i32
  }
}

</mosaic_0001>

<bundles_post_ra>
// kernel: tpu_custom_call.1
= control target key start
LH: loop header
LB: loop body
LE: loop exit
PB: predicated region body
PF: predicated region fallthrough
CT: control target
= control target key end

     0   :  { %s1839_s0 = inlined_call_operand.hbm [shape: f32[2,8,256], index: 0, kind: input, shape index: {}]   ;;  %s1840_s1 = inlined_call_operand.hbm [shape: f32[2,8,256], index: 1, kind: input, shape index: {}]   ;;  %s1841_s2 = inlined_call_operand.hbm [shape: f32[2,8,256], index: 2, kind: input, shape index: {}]   ;;  %s1842_s3 = inlined_call_operand.hbm [shape: f32[2,4,256], index: 3, kind: input, shape index: {}]   ;;  %s1843_s4 = inlined_call_operand.hbm [shape: f32[1,8,256], index: 4, kind: input, shape index: {}]   ;;  %s1844_s5 = inlined_call_operand.hbm [shape: f32[1,8,256], index: 5, kind: input, shape index: {}]   ;;  %s1845_s6 = inlined_call_operand.hbm [shape: f32[1,8,256], index: 6, kind: input, shape index: {}]   ;;  %s1846_s7 = inlined_call_operand.vmem [shape: f32[1,4,256], index: 7, kind: input, shape index: {}]   ;;  %s1847_s8 = inlined_call_operand.vmem [shape: f32[1,256], index: 8, kind: input, shape index: {}]   ;;  %s1848_s9 = inlined_call_operand.hbm [shape: f32[2,8,128], index: 9, kind: output, shape index: {}]  }
   0x1   :  { %1868 = sst [smem:[#allocation27_spill]] %s1839_s0 }
   0x2   :  { %1869 = sst [smem:[#allocation28_spill]] %s1840_s1 }
   0x3   :  { %1870 = sst [smem:[#allocation29_spill]] %s1842_s3 }
   0x4   :  { %1871 = sst [smem:[#allocation30_spill]] %s1846_s7 }
   0x5   :  { %1872 = sst [smem:[#allocation31_spill]] %s1847_s8 }
   0x6   :  { %1873 = sst [smem:[#allocation32_spill]] %s1848_s9 }
   0x7   :  { %14 = vsyncpa [#allocation3], 0 }
   0x8   :  { %16 = vsyncpa [#allocation3 + $0x1], 0 }
   0x9   :  { %17 = vsyncpa [#allocation6], 0 }
   0xa   :  { %19 = vsyncpa [#allocation6 + $0x1], 0 }
   0xb   :  { %20 = vsyncpa [#allocation9], 0 }
   0xc   :  { %22 = vsyncpa [#allocation9 + $0x1], 0 }
   0xd   :  { %23 = vsyncpa [#allocation12], 0 }
   0xe   :  { %25 = vsyncpa [#allocation12 + $0x1], 0 }
   0xf   :  { %26 = vsyncpa [#allocation4], 0 }
  0x10   :  { %28 = vsyncpa [#allocation4 + $0x1], 0  ;;  %s1445_s30 = smov 0   ;;  %s1447_s10 = smov 0  }
  0x11   :  { %s1449_s11 = smov 0   ;;  %s1451_s12 = smov 0  }
  0x12 LB: > { %1874 = sst [smem:[#allocation20_spill]] %s1367_s30  ;;  %s1466_s13 = sadd.s32 4294967295, %s1379_s12   ;;  %s1379_s12 = sphi %s1451_s12, %s1911_s12   ;;  %s1375_s11 = sphi %s1449_s11, %s1913_s11   ;;  %s1371_s10 = sphi %s1447_s10, %s1915_s10   ;;  %s1367_s30 = sphi %s1445_s30, %s1914_s30  }
  0x13   : > { %1875 = sst [smem:[#allocation21_spill]] %s1375_s11  ;;  %s978_s14 = sadd.s32 4294967294, %s1379_s12  }
  0x14   : > { %1876 = sst [smem:[#allocation22_spill]] %s1379_s12  ;;  %s1470_s15 = sadd.s32 1, %s1379_s12  }
  0x15   : > { %1877 = sst [smem:[#allocation23_spill]] %s1470_s15  ;;  %s41_s16 = sadd.s32 1, %s1375_s11 }
  0x16   : > { %s38_s17 = ssub.s32 %s1379_s12, %s1470_s15  ;;  %p48_p0 = scmp.ne.s32.totalorder %s1375_s11, %s1371_s10 }
  0x17   : > { %p39_p1 = scmp.eq.s32.totalorder %s38_s17, 0  ;;  %p49_p2 = scmp.eq.s32.totalorder %s1379_s12, 0 }
  0x18   : > { %p54_p3 = scmp.ne.s32.totalorder %s1371_s10, %s1367_s30  ;;  %p55_p4 = scmp.eq.s32.totalorder %s1466_s13, 0 }
  0x19   : > { %s1482_s18 = scalar_select %p39_p1, %s1375_s11, %s41_s16  }
  0x1a   : > { %p50_p5 = por %p49_p2, %p48_p0  ;;  %p1484_p6 = por %p55_p4, %p54_p3 }
  0x1b   : > { %1878 = sst [smem:[#allocation24_spill]] %s1482_s18  ;;  %p286_p7 = scmp.eq.s32.totalorder %s1466_s13, 1 }
  0x1c   : > { %s1879_s19 = scalar_select %p1484_p6, 1, 0 }
  0x1d   : > { %p292_p8 = scmp.eq.s32.totalorder %s978_s14, 1  ;;  %p1051_p10 = scmp.lt.s32.totalorder %s1379_s12, 2 }
  0x1e   : > { %p1491_p11 = por %p286_p7, %p48_p0  ;;  %s1500_s22 = sand.u32 1, %s1375_s11  }
  0x1f   : > { %p1495_p12 = por %p292_p8, %p54_p3  ;;  %s1503_s23 = sshll.u32 %s1379_s12, 7 }
  0x20   : > { %s1880_s20 = scalar_select %p1491_p11, 1, 0 }
  0x21   : > { %s1882_s21 = scalar_select %p1495_p12, 1, 0 }
  0x22   : > { %1881 = sst [smem:[#allocation25_spill]] %s1880_s20  ;;  %s1506_s24 = sshll.u32 %s1500_s22, 4 }
  0x23   : > { %1883 = sst [smem:[#allocation26_spill]] %s1882_s21  ;;  %p1508_p13 = pnand %p1051_p10, %p50_p5 }
  0x24   : > { %s1513_s26 = sand.u32 1, %s1379_s12   ;;  %s1885_s1 = sld [smem:[#allocation28_spill]] }
  0x25   : > { %s336_s14 = scalar_lea.vmem [#allocation5], %s1506_s24  ;;  %p1531_p3 = pneg %p1508_p13 }
  0x26   : > { %s342_s16 = sshll.u32 %s336_s14, 4  ;;  %s1523_s16 = int_to_ptr.vmem [resolvable:$true] %s342_s16 }
  0x2a   : > { %s1519_s29 = scalar_lea.hbm %s1885_s1, %s1503_s23  ;;  %s1112_s14 = scalar_lea.hbm %s1885_s1, 512 }
  0x2b   : > { %s1107_s18 = scalar_lea.hbm %s1519_s29, 256  ;;  %p1113_p7 = scmp.lt.s32.totalorder %s1519_s29, %s1885_s1 }
  0x2c   : > { %p1108_p2 = scmp.ne.s32.totalorder %s1519_s29, %s1107_s18  ;;  %p1114_p8 = scmp.lt.s32.totalorder %s1112_s14, %s1107_s18 }
  0x2e   : > { %p1110_p4 = pnand %p1531_p3, %p1108_p2  ;;  %p1115_p10 = por %p1114_p8, %p1113_p7 }
  0x30   : > { %p1111_p5 = pneg %p1110_p4 }
  0x32   : > { %p1116_p9 = pnand %p1115_p10, %p1111_p5 }
  0x34   : > { %1119 = shalt.err (!%p1116_p9)
}
  0x35   : > { %s1120_s17 = scalar_lea.vmem %s1523_s16, 256  ;;  %s1381_s30 = smov [#allocation5]  }
  0x36   : > { %p1121_p0 = scmp.ne.s32.totalorder %s1523_s16, %s1120_s17  ;;  %s1125_s27 = sshll.u32 %s1381_s30, 4  ;;  %s1126_s27 = int_to_ptr.vmem [resolvable:$false] %s1125_s27 }
  0x37   : > { %s1127_s28 = scalar_lea.vmem %s1126_s27, 512  ;;  %p1128_p1 = scmp.lt.s32.totalorder %s1523_s16, %s1126_s27 }
  0x38   : > { %p1123_p2 = pnand %p1121_p0, %p1531_p3  ;;  %p1129_p12 = scmp.lt.s32.totalorder %s1127_s28, %s1120_s17 }
  0x3a   : > { %p1124_p4 = pneg %p1123_p2  ;;  %p1130_p11 = por %p1129_p12, %p1128_p1 }
  0x3c   : > { %p1131_p6 = pnand %p1130_p11, %p1124_p4 }
  0x3e   : > { %1134 = shalt.err (!%p1131_p6)
}
  0x3f   : > { %s1859_s15 = smov 256   ;;  %s1863_s18 = smov 128  }
  0x40   : > { %s1861_s30 = smov 8   ;;  %s1887_s21 = scalar_lea.sflag [#allocation6], %s1513_s26 }
  0x41   : > { %1031 = dma.hbm_to_vmem [thread:$0]  (!%p1508_p13), %s1519_s29, 256, %s1523_s16, %s1887_s21, %s1859_s15, %s1863_s18, %s1861_s30  }
  0x42   : > { %p1888_p6 = scmp.lt.s32.totalorder %s1379_s12, 3  ;;  %p1889_p9 = scmp.ge.s32.totalorder %s1379_s12, 1 }
  0x43   : > { %s1567_s14 = sshll.u32 %s1500_s22, 3  ;;  %s988_s27 = sshll.u32 %s1379_s12, 6 }
  0x44   : > { %p1562_p11 = pnand %p1889_p9, %p1888_p6  ;;  %s1891_s3 = sld [smem:[#allocation29_spill]] }
  0x45   : > { %s376_s20 = scalar_lea.vmem [#allocation8], %s1567_s14  ;;  %s1867_s16 = scalar_lea.sflag [#allocation9], %s1513_s26 }
  0x46   : > { %s1890_s17 = scalar_select %p1562_p11, 1, 0 }
  0x47   : > { %s382_s29 = sshll.u32 %s376_s20, 4  ;;  %s1576_s29 = int_to_ptr.vmem [resolvable:$true] %s382_s29 }
  0x4a   : > { %s1573_s9 = scalar_lea.hbm %s1891_s3, %s988_s27  ;;  %s1140_s18 = scalar_lea.hbm %s1891_s3, 256 }
  0x4b   : > { %s1135_s21 = scalar_lea.hbm %s1573_s9, 128  ;;  %p1141_p5 = scmp.lt.s32.totalorder %s1573_s9, %s1891_s3 }
  0x4c   : > { %p1136_p12 = scmp.ne.s32.totalorder %s1573_s9, %s1135_s21  ;;  %p1142_p7 = scmp.lt.s32.totalorder %s1140_s18, %s1135_s21 }
  0x4e   : > { %p1138_p0 = pnand %p1136_p12, %p1531_p3  ;;  %p1143_p8 = por %p1142_p7, %p1141_p5 }
  0x50   : > { %p1139_p1 = pneg %p1138_p0 }
  0x52   : > { %p1144_p10 = pnand %p1143_p8, %p1139_p1 }
  0x54   : > { %1147 = shalt.err (!%p1144_p10)
}
  0x55   : > { %s1148_s20 = scalar_lea.vmem %s1576_s29, 128  ;;  %s1385_s28 = smov [#allocation8]  }
  0x56   : > { %p1149_p2 = scmp.ne.s32.totalorder %s1576_s29, %s1148_s20  ;;  %s1153_s15 = sshll.u32 %s1385_s28, 4  ;;  %s1154_s15 = int_to_ptr.vmem [resolvable:$false] %s1153_s15 }
  0x57   : > { %s1155_s30 = scalar_lea.vmem %s1154_s15, 256  ;;  %p1156_p9 = scmp.lt.s32.totalorder %s1576_s29, %s1154_s15 }
  0x58   : > { %p1151_p4 = pnand %p1149_p2, %p1531_p3  ;;  %p1157_p12 = scmp.lt.s32.totalorder %s1155_s30, %s1148_s20 }
  0x5a   : > { %p1152_p6 = pneg %p1151_p4  ;;  %p1158_p0 = por %p1157_p12, %p1156_p9 }
  0x5c   : > { %p1159_p11 = pnand %p1158_p0, %p1152_p6 }
  0x5e   : > { %1162 = shalt.err (!%p1159_p11)
}
  0x5f   : > { %s1386_s18 = smov 64   ;;  %s1387_s21 = smov 4  }
  0x60   : > { %s1892_s1 = smov 128   ;;  %s1606_s20 = scalar_lea.hbm %s1844_s5, %s1503_s23 }
  0x61   : > { %1037 = dma.hbm_to_vmem [thread:$0]  (!%p1508_p13), %s1573_s9, 128, %s1576_s29, %s1867_s16, %s1892_s1, %s1386_s18, %s1387_s21  }
  0x62   : > { %s414_s15 = scalar_lea.vmem [#allocation11], %s1567_s14  ;;  %s1866_s3 = scalar_lea.sflag [#allocation12], %s1513_s26 }
  0x63   : > { %s421_s30 = sshll.u32 %s414_s15, 4  ;;  %s1163_s12 = scalar_lea.hbm %s1606_s20, 128  ;;  %s422_s30 = int_to_ptr.vmem [resolvable:$true] %s421_s30 }
  0x64   : > { %p1164_p11 = scmp.ne.s32.totalorder %s1606_s20, %s1163_s12  ;;  %s1168_s9 = scalar_lea.hbm %s1844_s5, 256 }
  0x65   : > { %p1169_p7 = scmp.lt.s32.totalorder %s1606_s20, %s1844_s5  ;;  %p1170_p8 = scmp.lt.s32.totalorder %s1168_s9, %s1163_s12 }
  0x66   : > { %p1166_p1 = pnand %p1164_p11, %p1531_p3 }
  0x67   : > { %p1171_p10 = por %p1170_p8, %p1169_p7 }
  0x68   : > { %p1167_p5 = pneg %p1166_p1 }
  0x6a   : > { %p1172_p2 = pnand %p1171_p10, %p1167_p5 }
  0x6c   : > { %1175 = shalt.err (!%p1172_p2)
}
  0x6d   : > { %s1176_s21 = scalar_lea.vmem %s422_s30, 128  ;;  %s1388_s27 = smov [#allocation11]  }
  0x6e   : > { %p1177_p4 = scmp.ne.s32.totalorder %s422_s30, %s1176_s21  ;;  %s1181_s28 = sshll.u32 %s1388_s27, 4  ;;  %s1182_s28 = int_to_ptr.vmem [resolvable:$false] %s1181_s28 }
  0x6f   : > { %s1183_s15 = scalar_lea.vmem %s1182_s28, 256  ;;  %p1184_p12 = scmp.lt.s32.totalorder %s422_s30, %s1182_s28 }
  0x70   : > { %p1179_p6 = pnand %p1177_p4, %p1531_p3  ;;  %p1185_p0 = scmp.lt.s32.totalorder %s1183_s15, %s1176_s21 }
  0x72   : > { %p1180_p9 = pneg %p1179_p6  ;;  %p1186_p11 = por %p1185_p0, %p1184_p12 }
  0x74   : > { %p1187_p1 = pnand %p1186_p11, %p1180_p9 }
  0x76   : > { %1190 = shalt.err (!%p1187_p1)
}
  0x77   : > { %1043 = dma.hbm_to_vmem [thread:$0]  (!%p1508_p13), %s1606_s20, 128, %s422_s30, %s1866_s3  }
  0x78   : > { %s1893_s0 = sld [smem:[#allocation27_spill]]  ;;  %s316_s9 = scalar_lea.vmem [#allocation2], %s1506_s24 }
  0x79   : > { %s322_s29 = sshll.u32 %s316_s9, 4  ;;  %s1641_s27 = scalar_lea.hbm %s1841_s2, %s1503_s23  ;;  %s1635_s29 = int_to_ptr.vmem [resolvable:$true] %s322_s29 }
  0x7a   : > { %s313_s28 = scalar_lea.sflag [#allocation3], %s1500_s22 }
  0x7e   : > { %s1632_s12 = scalar_lea.hbm %s1893_s0, %s1503_s23  ;;  %s1196_s7 = scalar_lea.hbm %s1893_s0, 512 }
  0x7f   : > { %s1191_s15 = scalar_lea.hbm %s1632_s12, 256  ;;  %p1197_p10 = scmp.lt.s32.totalorder %s1632_s12, %s1893_s0 }
  0x80   : > { %p1192_p5 = scmp.ne.s32.totalorder %s1632_s12, %s1191_s15  ;;  %p1198_p2 = scmp.lt.s32.totalorder %s1196_s7, %s1191_s15 }
  0x82   : > { %p1194_p7 = pnand %p1192_p5, %p1531_p3  ;;  %p1199_p4 = por %p1198_p2, %p1197_p10 }
  0x84   : > { %p1195_p8 = pneg %p1194_p7 }
  0x86   : > { %p1200_p6 = pnand %p1199_p4, %p1195_p8 }
  0x88   : > { %1203 = shalt.err (!%p1200_p6)
}
  0x89   : > { %s1204_s22 = scalar_lea.vmem %s1635_s29, 256  ;;  %s1389_s9 = smov [#allocation2]  }
  0x8a   : > { %p1205_p9 = scmp.ne.s32.totalorder %s1635_s29, %s1204_s22  ;;  %s1209_s18 = sshll.u32 %s1389_s9, 4  ;;  %s1210_s18 = int_to_ptr.vmem [resolvable:$false] %s1209_s18 }
  0x8b   : > { %s1211_s21 = scalar_lea.vmem %s1210_s18, 512  ;;  %p1212_p11 = scmp.lt.s32.totalorder %s1635_s29, %s1210_s18 }
  0x8c   : > { %p1207_p12 = pnand %p1205_p9, %p1531_p3  ;;  %p1213_p1 = scmp.lt.s32.totalorder %s1211_s21, %s1204_s22 }
  0x8e   : > { %p1208_p0 = pneg %p1207_p12  ;;  %p1214_p5 = por %p1213_p1, %p1212_p11 }
  0x90   : > { %p1215_p7 = pnand %p1214_p5, %p1208_p0 }
  0x92   : > { %1218 = shalt.err (!%p1215_p7)
}
  0x93   : > { %s1894_s3 = smov 8   ;;  %s1895_s15 = smov 256  }
  0x94   : > { %1028 = dma.hbm_to_vmem [thread:$0]  (!%p1508_p13), %s1632_s12, 256, %s1635_s29, %s313_s28, %s1895_s15, %s1892_s1, %s1894_s3  }
  0x95   : > { %s356_s20 = scalar_lea.vmem [#allocation7], %s1506_s24  ;;  %s1674_s22 = scalar_lea.hbm %s1843_s4, %s1503_s23 }
  0x96   : > { %s362_s30 = sshll.u32 %s356_s20, 4  ;;  %s1219_s9 = scalar_lea.hbm %s1641_s27, 256  ;;  %s1668_s30 = int_to_ptr.vmem [resolvable:$true] %s362_s30 }
  0x97   : > { %p1220_p8 = scmp.ne.s32.totalorder %s1641_s27, %s1219_s9  ;;  %s1224_s16 = scalar_lea.hbm %s1841_s2, 512 }
  0x98   : > { %p1225_p4 = scmp.lt.s32.totalorder %s1641_s27, %s1841_s2  ;;  %p1226_p6 = scmp.lt.s32.totalorder %s1224_s16, %s1219_s9 }
  0x99   : > { %p1222_p10 = pnand %p1220_p8, %p1531_p3 }
  0x9a   : > { %p1227_p9 = por %p1226_p6, %p1225_p4 }
  0x9b   : > { %p1223_p2 = pneg %p1222_p10 }
  0x9d   : > { %p1228_p12 = pnand %p1227_p9, %p1223_p2 }
  0x9f   : > { %1231 = shalt.err (!%p1228_p12)
}
  0xa0   : > { %s1232_s24 = scalar_lea.vmem %s1668_s30, 256  ;;  %s1390_s29 = smov [#allocation7]  }
  0xa1   : > { %p1233_p0 = scmp.ne.s32.totalorder %s1668_s30, %s1232_s24  ;;  %s1237_s28 = sshll.u32 %s1390_s29, 4  ;;  %s1238_s28 = int_to_ptr.vmem [resolvable:$false] %s1237_s28 }
  0xa2   : > { %s1239_s20 = scalar_lea.vmem %s1238_s28, 512  ;;  %p1240_p5 = scmp.lt.s32.totalorder %s1668_s30, %s1238_s28 }
  0xa3   : > { %p1235_p11 = pnand %p1233_p0, %p1531_p3  ;;  %p1241_p7 = scmp.lt.s32.totalorder %s1239_s20, %s1232_s24 }
  0xa5   : > { %p1236_p1 = pneg %p1235_p11  ;;  %p1242_p8 = por %p1241_p7, %p1240_p5 }
  0xa7   : > { %p1243_p10 = pnand %p1242_p8, %p1236_p1 }
  0xa9   : > { %1246 = shalt.err (!%p1243_p10)
}
  0xaa   : > { %s1896_s0 = scalar_lea.sflag [#allocation6], %s1513_s26  ;;  %s396_s16 = scalar_lea.vmem [#allocation10], %s1567_s14 }
  0xab   : > { %1034 = dma.hbm_to_vmem [thread:$0]  (!%p1508_p13), %s1641_s27, 256, %s1668_s30, %s1896_s0, %s1895_s15, %s1892_s1, %s1894_s3  }
  0xac   : > { %s403_s7 = sshll.u32 %s396_s16, 4  ;;  %s1706_s18 = scalar_lea.hbm %s1845_s6, %s1503_s23  ;;  %s404_s7 = int_to_ptr.vmem [resolvable:$true] %s403_s7 }
  0xad   : > { %s1247_s21 = scalar_lea.hbm %s1674_s22, 128  ;;  %s1252_s29 = scalar_lea.hbm %s1843_s4, 256 }
  0xae   : > { %p1248_p2 = scmp.ne.s32.totalorder %s1674_s22, %s1247_s21  ;;  %p1253_p9 = scmp.lt.s32.totalorder %s1674_s22, %s1843_s4 }
  0xaf   : > { %p1254_p12 = scmp.lt.s32.totalorder %s1252_s29, %s1247_s21 }
  0xb0   : > { %p1250_p4 = pnand %p1248_p2, %p1531_p3 }
  0xb1   : > { %p1255_p0 = por %p1254_p12, %p1253_p9 }
  0xb2   : > { %p1251_p6 = pneg %p1250_p4 }
  0xb4   : > { %p1256_p11 = pnand %p1255_p0, %p1251_p6 }
  0xb6   : > { %1259 = shalt.err (!%p1256_p11)
}
  0xb7   : > { %s1260_s1 = scalar_lea.vmem %s404_s7, 128  ;;  %s1391_s23 = smov [#allocation10]  }
  0xb8   : > { %p1261_p1 = scmp.ne.s32.totalorder %s404_s7, %s1260_s1  ;;  %s1265_s27 = sshll.u32 %s1391_s23, 4  ;;  %s1266_s27 = int_to_ptr.vmem [resolvable:$false] %s1265_s27 }
  0xb9   : > { %s1267_s3 = scalar_lea.vmem %s1266_s27, 256  ;;  %p1268_p8 = scmp.lt.s32.totalorder %s404_s7, %s1266_s27 }
  0xba   : > { %p1263_p5 = pnand %p1261_p1, %p1531_p3  ;;  %p1269_p10 = scmp.lt.s32.totalorder %s1267_s3, %s1260_s1 }
  0xbc   : > { %p1264_p7 = pneg %p1263_p5  ;;  %p1270_p2 = por %p1269_p10, %p1268_p8 }
  0xbe   : > { %p1271_p4 = pnand %p1270_p2, %p1264_p7 }
  0xc0   : > { %1274 = shalt.err (!%p1271_p4)
}
  0xc1   : > { %s1897_s15 = scalar_lea.sflag [#allocation9], %s1513_s26  ;;  %s432_s30 = scalar_lea.vmem [#allocation13], %s1567_s14 }
  0xc2   : > { %1040 = dma.hbm_to_vmem [thread:$0]  (!%p1508_p13), %s1674_s22, 128, %s404_s7, %s1897_s15  }
  0xc3   : > { %s439_s0 = sshll.u32 %s432_s30, 4  ;;  %s1275_s16 = scalar_lea.hbm %s1706_s18, 128  ;;  %s440_s0 = int_to_ptr.vmem [resolvable:$true] %s439_s0 }
  0xc4   : > { %p1276_p6 = scmp.ne.s32.totalorder %s1706_s18, %s1275_s16  ;;  %s1280_s21 = scalar_lea.hbm %s1845_s6, 256 }
  0xc5   : > { %p1281_p0 = scmp.lt.s32.totalorder %s1706_s18, %s1845_s6  ;;  %p1282_p11 = scmp.lt.s32.totalorder %s1280_s21, %s1275_s16 }
  0xc6   : > { %p1278_p9 = pnand %p1276_p6, %p1531_p3 }
  0xc7   : > { %p1283_p1 = por %p1282_p11, %p1281_p0 }
  0xc8   : > { %p1279_p12 = pneg %p1278_p9 }
  0xca   : > { %p1284_p5 = pnand %p1283_p1, %p1279_p12 }
  0xcc   : > { %1287 = shalt.err (!%p1284_p5)
}
  0xcd   : > { %s1288_s14 = scalar_lea.vmem %s440_s0, 128  ;;  %s1392_s22 = smov [#allocation13]  }
  0xce   : > { %p1289_p7 = scmp.ne.s32.totalorder %s440_s0, %s1288_s14  ;;  %s1293_s7 = sshll.u32 %s1392_s22, 4  ;;  %s1294_s7 = int_to_ptr.vmem [resolvable:$false] %s1293_s7 }
  0xcf   : > { %s1295_s29 = scalar_lea.vmem %s1294_s7, 256  ;;  %p1296_p2 = scmp.lt.s32.totalorder %s440_s0, %s1294_s7 }
  0xd0   : > { %p1291_p8 = pnand %p1289_p7, %p1531_p3  ;;  %p1297_p4 = scmp.lt.s32.totalorder %s1295_s29, %s1288_s14 }
  0xd2   : > { %p1292_p10 = pneg %p1291_p8  ;;  %p1298_p6 = por %p1297_p4, %p1296_p2 }
  0xd4   : > { %p1299_p9 = pnand %p1298_p6, %p1292_p10 }
  0xd6   : > { %1302 = shalt.err (!%p1299_p9)
}
  0xd7   : > { %s1898_s28 = scalar_lea.sflag [#allocation12], %s1513_s26  ;;  %p1899_p12 = scmp.ne.s32.totalorder %s1890_s17, 0 }
  0xd8   : > { %1046 = dma.hbm_to_vmem [thread:$0]  (!%p1508_p13), %s1706_s18, 128, %s440_s0, %s1898_s28  }
  0xd9   : > { %461 = sbr.rel (%p1899_p12) target bundleno = 450 (0x1c2), region = 56  ;;  %s1748_s11 = sand.u32 (!%p1899_p12), 1, %s1371_s10  }
  0xda   : > { %s1751_s20 = sshll.u32 (!%p1899_p12), %s1748_s11, 4  ;;  %s464_s1 = scalar_lea.sflag (!%p1899_p12), [#allocation3], %s1748_s11 }
  0xdb   : > { %s467_s23 = scalar_lea.vmem (!%p1899_p12), [#allocation2], %s1751_s20  ;;  %p1900_p3 = scmp.ne.s32.totalorder (!%p1899_p12), %s1879_s19, 0 }
  0xde   : > { %1346 = dma.done.wait (%p1900_p3), %s464_s1, 256  }
  0xdf   : > { %1348 = vsyncadd (%p1900_p3), %s464_s1, 4294967040  ;;  %s472_s25 = sand.u32 1, %s1466_s13   ;;  %s476_s17 = scalar_lea.vmem [#allocation5], %s1751_s20 }
  0xe0   : > { %s473_s26 = scalar_lea.sflag [#allocation6], %s472_s25 }
  0xe1   : > { %1350 = dma.done.wait (%p1900_p3), %s473_s26, 512  }
  0xe2   : > { %1352 = vsyncadd (%p1900_p3), %s473_s26, 4294966784  ;;  %s1766_s18 = sshll.u32 %s1748_s11, 3  ;;  %s485_s27 = scalar_lea.vmem [#allocation7], %s1751_s20 }
  0xe3   : > { %s491_s3 = scalar_lea.sflag [#allocation9], %s472_s25  ;;  %s494_s15 = scalar_lea.vmem [#allocation8], %s1766_s18 }
  0xe4   : > { %1354 = dma.done.wait (%p1900_p3), %s491_s3, 256  }
  0xe5   : > { %1356 = vsyncadd (%p1900_p3), %s491_s3, 4294967040  ;;  %s503_s30 = scalar_lea.vmem [#allocation10], %s1766_s18  ;;  %s509_s0 = scalar_lea.sflag [#allocation12], %s472_s25 }
  0xe6   : > { %s512_s16 = scalar_lea.vmem [#allocation11], %s1766_s18 }
  0xe7   : > { %1358 = dma.done.wait (%p1900_p3), %s509_s0, 256  }
  0xe8   : > { %1360 = vsyncadd (%p1900_p3), %s509_s0, 4294967040  ;;  %v601_v0 = vld [vmem:[%s467_s23] sm:$0xff]  ;;  %v602_v1 = vld [vmem:[%s467_s23 + $0x8] sm:$0xff]  ;;  %p593_p13 = scmp.lt.s32.totalorder %s1466_s13, 1  ;;  %s1901_s12 = sld [smem:[#allocation30_spill]]  ;;  %vm693_vm0 = vcmask 1043456   ;;  %v712_v38 = vlaneseq }
  0xe9   : > { %v604_v2 = vmax.f32 %v601_v0, 1.1754944e-38  ;;  %v605_v3 = vmax.f32 %v602_v1, 1.1754944e-38  ;;  %v626_v4 = vld [vmem:[%s476_s17] sm:$0xff]  ;;  %v627_v5 = vld [vmem:[%s476_s17 + $0x8] sm:$0xff]  ;;  %s521_s14 = scalar_lea.vmem [#allocation13], %s1766_s18  ;;  %s1902_s29 = sld [smem:[#allocation31_spill]] }
  0xea   : > { %v629_v6 = vmax.f32 %v626_v4, 1.1754944e-38  ;;  %v630_v7 = vmax.f32 %v627_v5, 1.1754944e-38  ;;  %v653_v8 = vld [vmem:[%s485_s27] sm:$0xff]  ;;  %v654_v9 = vld [vmem:[%s485_s27 + $0x8] sm:$0xff]  ;;  %s1785_s19 = scalar_select %p593_p13, %s1466_s13, 1  ;;  %vm728_vm2 = vcmask 1041409  }
  0xeb   : > { %1091 = vlog2.f32 %v604_v2  ;;  %v656_v10 = vmax.f32 %v653_v8, 1.1754944e-38  ;;  %v680_v11 = vld [vmem:[%s494_s15] sm:$0xf]  ;;  %v657_v12 = vmax.f32 %v654_v9, 1.1754944e-38  ;;  %v1780_v13 = vld [vmem:[%s494_s15 + $0x4] sm:$0xf] }
  0xec   : > { %1093 = vlog2.f32 %v605_v3  ;;  %v683_v14 = vmax.f32 %v680_v11, 1.1754944e-38  ;;  %v684_v15 = vmax.f32 %v1780_v13, 1.1754944e-38  ;;  %s1004_s8 = sshll.u32 %s1785_s19, 2  ;;  %v603_v18 = vld [vmem:[%s503_s30] sm:$0xff]  ;;  %v628_v24 = vld [vmem:[%s512_s16] sm:$0xff]  ;;  %vm732_vm4 = vcmask 1041408  }
  0xed   : > { %1095 = vlog2.f32 %v629_v6  ;;  %v655_v32 = vld [vmem:[%s521_s14] sm:$0xff]  ;;  %s1903_s20 = sld [smem:[#allocation25_spill]]  ;;  %s1006_s1 = sshll.u32 %s1466_s13, 7 }
  0xee   : > { %1097 = vlog2.f32 %v630_v7  ;;  %s596_s24 = scalar_lea.vmem %s1901_s12, %s1004_s8  ;;  %s592_s23 = scalar_lea.vmem [#allocation14], %s1766_s18 }
  0xef   : > { %1099 = vlog2.f32 %v656_v10  ;;  %v682_v43 = vld [vmem:[%s596_s24] sm:$0xf]  ;;  %s599_s28 = scalar_lea.vmem %s1902_s29, %s1785_s19  ;;  %s758_s25 = sshll.u32 %s592_s23, 4  ;;  %s759_s25 = int_to_ptr.vmem [resolvable:$true] %s758_s25 }
  0xf0   : > { %1101 = vlog2.f32 %v657_v12  ;;  %s1904_s27 = sld [smem:[#allocation32_spill]]  ;;  %s745_s15 = scalar_lea.sflag [#allocation4], %s1748_s11 }
  0xf1   : > { %1103 = vlog2.f32 %v683_v14  ;;  %s1303_s30 = scalar_lea.vmem %s759_s25, 128  ;;  %s1394_s0 = smov [#allocation14]  }
  0xf2   : > { %1105 = vlog2.f32 %v684_v15  ;;  %p1304_p0 = scmp.ne.s32.totalorder %s759_s25, %s1303_s30  ;;  %s1307_s16 = sshll.u32 %s1394_s0, 4  ;;  %s1308_s16 = int_to_ptr.vmem [resolvable:$false] %s1307_s16 }
  0xf3   : > { %p1905_p11 = scmp.ne.s32.totalorder %s1903_s20, 0  ;;  %s1309_s13 = scalar_lea.vmem %s1308_s16, 256 }
  0xf4   : > { %p1310_p7 = scmp.lt.s32.totalorder %s759_s25, %s1308_s16  ;;  %p1311_p8 = scmp.lt.s32.totalorder %s1309_s13, %s1303_s30 }
  0xf5   : > { %p1305_p1 = pnand %p1304_p0, %p1905_p11 }
  0xf6   : > { %s756_s3 = scalar_lea.hbm %s1904_s27, %s1006_s1  ;;  %p1312_p10 = por %p1311_p8, %p1310_p7 }
  0xf7   : > { %p1306_p5 = pneg %p1305_p1 }
  0xf8   : > { %v1092_v16 = vpop.eup %1091 }
  0xf9   : > { %v1094_v17 = vpop.eup %1093  ;;  %v607_v19 = vmul.f32 0.6931472, %v1092_v16  ;;  %p1313_p2 = pnand %p1312_p10, %p1306_p5 }
  0xfa   : > { %v1096_v20 = vpop.eup %1095  ;;  %v609_v21 = vmul.f32 0.6931472, %v1094_v17 }
  0xfb   : > { %v1098_v22 = vpop.eup %1097  ;;  %v610_v23 = vsub.f32 %v607_v19, %v603_v18  ;;  %v632_v25 = vmul.f32 0.6931472, %v1096_v20 }
  0xfc   : > { %v1100_v26 = vpop.eup %1099  ;;  %v611_v27 = vsub.f32 %v609_v21, %v603_v18  ;;  %v634_v28 = vmul.f32 0.6931472, %v1098_v22 }
  0xfd   : > { %v1102_v29 = vpop.eup %1101  ;;  %v612_v30 = vmul.f32 %v610_v23, %v601_v0  ;;  %v635_v31 = vsub.f32 %v632_v25, %v628_v24  ;;  %v659_v33 = vmul.f32 0.6931472, %v1100_v26 }
  0xfe   : > { %v1104_v34 = vpop.eup %1103  ;;  %v613_v35 = vmul.f32 %v611_v27, %v602_v1  ;;  %v636_v36 = vsub.f32 %v634_v28, %v628_v24  ;;  %v661_v37 = vmul.f32 0.6931472, %v1102_v29  ;;  %v713_v28 = vshrl.u32 %v712_v38, 7 }
  0xff   : > { %v1106_v39 = vpop.eup %1105  ;;  %v614_v40 = vrot.slane %v612_v30, 4  ;;  %v637_v41 = vmul.f32 %v635_v31, %v626_v4  ;;  %v662_v42 = vsub.f32 %v659_v33, %v655_v32  ;;  %v686_v44 = vmul.f32 0.6931472, %v1104_v34 }
 0x100   : > { %v620_v45 = vrot.slane %v613_v35, 4  ;;  %v638_v46 = vmul.f32 %v636_v36, %v627_v5  ;;  %v663_v47 = vsub.f32 %v661_v37, %v655_v32  ;;  %v688_v48 = vmul.f32 0.6931472, %v1106_v39 }
 0x101   : > { %v615_v49 = vadd.f32 %v614_v40, %v612_v30  ;;  %v639_v50 = vrot.slane %v637_v41, 4  ;;  %v664_v51 = vmul.f32 %v662_v42, %v653_v8  ;;  %v689_v52 = vsub.f32 %v686_v44, %v682_v43 }
 0x102   : > { %v621_v53 = vadd.f32 %v620_v45, %v613_v35  ;;  %v645_v54 = vrot.slane %v638_v46, 4  ;;  %v665_v55 = vmul.f32 %v663_v47, %v654_v9  ;;  %v690_v56 = vsub.f32 %v688_v48, %v682_v43  ;;  %v600_v35 = vld [vmem:[%s599_s28] sm:$0x1] }
 0x103   : > { %v616_v57 = vrot.slane %v615_v49, 2  ;;  %v640_v58 = vadd.f32 %v639_v50, %v637_v41  ;;  %v666_v59 = vrot.slane %v664_v51, 4  ;;  %v691_v60 = vmul.f32 %v689_v52, %v680_v11 }
 0x104   : > { %v622_v61 = vrot.slane %v621_v53, 2  ;;  %v646_v62 = vadd.f32 %v645_v54, %v638_v46  ;;  %v672_v63 = vrot.slane %v665_v55, 4  ;;  %v692_v0 = vmul.f32 %v690_v56, %v1780_v13 }
 0x105   : > { %v617_v1 = vadd.f32 %v616_v57, %v615_v49  ;;  %v641_v2 = vrot.slane %v640_v58, 2  ;;  %v667_v3 = vadd.f32 %v666_v59, %v664_v51  ;;  %v694_v4 = vsel %vm693_vm0, %v691_v60, 0.0 }
 0x106   : > { %v623_v5 = vadd.f32 %v622_v61, %v621_v53  ;;  %v647_v6 = vrot.slane %v646_v62, 2  ;;  %v673_v7 = vadd.f32 %v672_v63, %v665_v55  ;;  %v695_v8 = vrot.slane %v694_v4, 4 }
 0x107   : > { %v618_v9 = vrot.slane %v617_v1, 1  ;;  %v642_v10 = vadd.f32 %v641_v2, %v640_v58  ;;  %v668_v12 = vrot.slane %v667_v3, 2  ;;  %v701_v11 = vsel %vm693_vm0, %v692_v0, 0.0 }
 0x108   : > { %v624_v14 = vrot.slane %v623_v5, 1  ;;  %v648_v15 = vadd.f32 %v647_v6, %v646_v62  ;;  %v674_v16 = vrot.slane %v673_v7, 2  ;;  %v696_v17 = vadd.f32 %v695_v8, %v694_v4 }
 0x109   : > { %v619_v13 = vadd.f32 %v618_v9, %v617_v1  ;;  %v643_v18 = vrot.slane %v642_v10, 1  ;;  %v669_v19 = vadd.f32 %v668_v12, %v667_v3  ;;  %v702_v20 = vrot.slane %v701_v11, 4 }
 0x10a   : > { %v625_v21 = vadd.f32 %v624_v14, %v623_v5  ;;  %v649_v22 = vrot.slane %v648_v15, 1  ;;  %v675_v23 = vadd.f32 %v674_v16, %v673_v7  ;;  %v697_v24 = vrot.slane %v696_v17, 2 }
 0x10b   : > { %v644_v25 = vadd.f32 %v643_v18, %v642_v10  ;;  %v670_v26 = vrot.slane %v669_v19, 1  ;;  %v703_v27 = vadd.f32 %v702_v20, %v701_v11  ;;  %vm710_vm1 = vcmp.gt.f32.partialorder %v600_v35, 0.0 }
 0x10c   : > { %v650_v29 = vadd.f32 %v649_v22, %v648_v15  ;;  %v676_v30 = vrot.slane %v675_v23, 1  ;;  %v698_v31 = vadd.f32 %v697_v24, %v696_v17  ;;  %v714_v42 = vsub.s32 0, %v713_v28 }
 0x10d   : > { %v651_v32 = vadd.f32 %v644_v25, %v619_v13  ;;  %v671_v33 = vadd.f32 %v670_v26, %v669_v19  ;;  %v704_v34 = vrot.slane %v703_v27, 2  ;;  %v1393_v46 = vmov 0  }
 0x10e   : > { %v652_v36 = vadd.f32 %v650_v29, %v625_v21  ;;  %v677_v37 = vadd.f32 %v676_v30, %v675_v23  ;;  %v699_v39 = vrot.slane %v698_v31, 1  ;;  %v719_v47 = vsel %vm710_vm1, 1, %v1393_v46 }
 0x10f   : > { %v678_v40 = vadd.f32 %v671_v33, %v651_v32  ;;  %v705_v41 = vadd.f32 %v704_v34, %v703_v27  ;;  %v715_v49 = vrot.slane %v600_v35, %v714_v42  ;;  %v723_v51 = vrot.slane %v719_v47, %v714_v42 }
 0x110   : > { %v700_v43 = vadd.f32 %v699_v39, %v698_v31  ;;  %v679_v44 = vadd.f32 %v677_v37, %v652_v36 }
 0x111   : > { %v706_v45 = vrot.slane %v705_v41, 1  ;;  %vm724_vm3 = vcmp.eq.s32.totalorder %v723_v51, 1 }
 0x112   : > { %v708_v48 = vadd.f32 %v700_v43, %v678_v40 }
 0x113   : > { %v707_v38 = vadd.f32 %v706_v45, %v705_v41 }
 0x114   : > { %v717_v52 = vmul.f32 %v715_v49, %v708_v48 }
 0x115   : > { %v709_v50 = vadd.f32 %v707_v38, %v679_v44 }
 0x117   : > { %v718_v53 = vmul.f32 %v715_v49, %v709_v50 }
 0x119   : > { %v727_v54 = vrot.slane %v718_v53, 7 }
 0x11b   : > { %v729_v55 = vsel %vm728_vm2, %v727_v54, %v717_v52 }
 0x11c   : > { %v731_v56 = vsel %vm724_vm3, %v729_v55, 0.0 }
 0x11d   : > { %v733_v57 = vsel %vm732_vm4, %v731_v56, 0.0 }
 0x11e   : > { %734 = vadd.xlane.f32.xlu0 %v733_v57 }
 0x1a7   : > { %v735_v58 = vpop.xlane.xlu0 %734 }
 0x1a8   : > { %v736_v59 = vsel %vm732_vm4, %v735_v58, 0.0 }
 0x1a9   : > { %v737_v60 = vrot.slane %v736_v59, 4 }
 0x1ab   : > { %v738_v61 = vadd.f32 %v737_v60, %v736_v59 }
 0x1ad   : > { %v739_v62 = vrot.slane %v738_v61, 2 }
 0x1af   : > { %v740_v63 = vadd.f32 %v739_v62, %v738_v61 }
 0x1b1   : > { %v741_v0 = vrot.slane %v740_v63, 1 }
 0x1b3   : > { %v742_v1 = vadd.f32 %v741_v0, %v740_v63 }
 0x1b5   : > { %743 = vst [vmem:[%s592_s23] sm:$0xff] %v742_v1 }
 0x1b6   : > { %1316 = shalt.err (!%p1313_p2)
}
 0x1b7   : > { %s1317_s18 = scalar_lea.hbm %s756_s3, 128  ;;  %s1321_s8 = scalar_lea.hbm %s1904_s27, 256 }
 0x1b8   : > { %p1318_p4 = scmp.ne.s32.totalorder %s756_s3, %s1317_s18  ;;  %p1322_p12 = scmp.lt.s32.totalorder %s756_s3, %s1904_s27 }
 0x1b9   : > { %p1323_p3 = scmp.lt.s32.totalorder %s1321_s8, %s1317_s18 }
 0x1ba   : > { %p1319_p6 = pnand %p1318_p4, %p1905_p11 }
 0x1bb   : > { %p1324_p13 = por %p1323_p3, %p1322_p12 }
 0x1bc   : > { %p1320_p9 = pneg %p1319_p6 }
 0x1be   : > { %p1325_p0 = pnand %p1324_p13, %p1320_p9 }
 0x1c0   : > { %1328 = shalt.err (!%p1325_p0)
}
 0x1c1   : > { %1023 = dma.vmem_to_hbm [thread:$0]  (%p1905_p11), %s759_s25, 128, %s756_s3, %s745_s15  }
 0x1c2 PF: > { %s1906_s12 = sld [smem:[#allocation20_spill]] }
 0x1c3   : > { %s1907_s24 = sld [smem:[#allocation26_spill]] }
 0x1c4   : > { %s1908_s14 = sld [smem:[#allocation22_spill]] }
 0x1c8   : > { %s770_s22 = sand.u32 1, %s1906_s12  }
 0x1c9   : > { %p1909_p1 = scmp.ne.s32.totalorder %s1907_s24, 0  ;;  %s771_s7 = scalar_lea.sflag [#allocation4], %s770_s22 }
 0x1ca   : > { %p1910_p5 = scmp.ge.s32.totalorder %s1908_s14, 2 }
 0x1cc   : > { %p1048_p7 = pnand %p1910_p5, %p1909_p1 }
 0x1ce   : > { %p1049_p8 = pneg %p1048_p7 }
 0x1d0   : > { %1362 = dma.done.wait (%p1049_p8), %s771_s7, 128  }
 0x1d1   : > { %1364 = vsyncadd (%p1049_p8), %s771_s7, 4294967168  ;;  %s1911_s12 = sld [smem:[#allocation23_spill]]  ;;  %s1914_s30 = smov %s1371_s10 }
 0x1d2   : > { %s1912_s29 = sld [smem:[#allocation21_spill]] }
 0x1d3   : > { %s1913_s11 = sld [smem:[#allocation24_spill]] }
 0x1d7   : > { %p31_p10 = scmp.ge.s32.totalorder %s1911_s12, 4  }
 0x1d8   : > { %s1915_s10 = smov %s1912_s29 }
 0x1d9   :  { %33 = sbr.rel (!%p31_p10) target bundleno = 18 (0x12), region = 179 }
 0x1de   :  { %776 = vsyncpa [#allocation3], 1 }
 0x1df   :  { %778 = vsyncpa [#allocation3 + $0x1], 1 }
 0x1e0   :  { %779 = vsyncpa [#allocation6], 1 }
 0x1e1   :  { %781 = vsyncpa [#allocation6 + $0x1], 1 }
 0x1e2   :  { %782 = vsyncpa [#allocation9], 1 }
 0x1e3   :  { %784 = vsyncpa [#allocation9 + $0x1], 1 }
 0x1e4   :  { %785 = vsyncpa [#allocation12], 1 }
 0x1e5   :  { %787 = vsyncpa [#allocation12 + $0x1], 1 }
 0x1e6   :  { %788 = vsyncpa [#allocation4], 1 }
 0x1e7   :  { %790 = vsyncpa [#allocation4 + $0x1], 1 }

</bundles_post_ra>
